<compile_context>
chip_gen: v7x
topology: tpu7x:2x2x1
jax: 0.10.0
libtpu: 0.0.40
codegen_flags: <defaults>
</compile_context>

<pallas_src>
import functools

import jax
import jax.numpy as jnp
from jax.experimental import pallas as pl
from jax.experimental.pallas import tpu as pltpu

MIN_NORM = 1e-15
BALL_EPS_F32 = 4e-3            # geoopt BALL_EPS[torch.float32]
MAXNORM = 1.0 - BALL_EPS_F32   # projection radius for c=1, float32


def _round_up(n, m):
    return ((n + m - 1) // m) * m


def _poincare_plane_kernel(x_ref, nt_ref, a_norm_ref, out_ref, *, logits_multiplier):
    """One (TB, D) tile of rows against all (padded) planes.

    x_ref      : (TB, D)   euclidean inputs (f32)
    nt_ref     : (D, Pp)   plane normals, transposed + zero-padded to lane-dense Pp
    a_norm_ref : (1, Pp)   per-plane normal norms (0 for padding columns)
    out_ref    : (TB, Pp)  signed, scaled plane distances
    """
    x = x_ref[...]
    nt = nt_ref[...]
    a_norm = a_norm_ref[...]

    # expmap0 (c=1) + project-to-ball, collapsed to a single lane reduction:
    #   xb = tanh(||u||) * u / ||u||   =>   ||xb|| == tanh(||u||)
    #   projection:  ||x|| <= 1 - eps  =>   r = min(tanh(||u||), 1 - eps)
    sumsq = jnp.sum(x * x, axis=-1, keepdims=True)                 # (TB, 1)
    u_norm = jnp.maximum(jnp.sqrt(sumsq), MIN_NORM)
    r = jnp.minimum(jnp.tanh(u_norm), MAXNORM)                     # = ||x_ball||
    xp = x * (r / u_norm)                                          # (TB, D)
    x_sq = jnp.maximum(r * r, MIN_NORM)                            # ||x_ball||^2
    # NOTE: exact division kept (not pl.reciprocal(approx=True)) — the output
    # is ~250x sensitive to this scale near the ball boundary.

    # dist2plane with bias p = 0  =>  mobius_add(-p, x) == x.
    dot = jnp.dot(xp, nt, preferred_element_type=jnp.float32,
                  precision=jax.lax.Precision.HIGHEST)             # (TB, Pp) MXU

    num = 2.0 * dot                                                # signed=True
    denom = (1.0 - x_sq) * a_norm
    sgn = jnp.where(denom >= 0.0, 1.0, -1.0)                       # geoopt clamp_abs
    denom = sgn * jnp.maximum(jnp.abs(denom), MIN_NORM)
    z = num / denom

    # Numerically stable arsinh: sign(z) * log(|z| + sqrt(1 + z^2)).
    abs_z = jnp.abs(z)
    asinh = jnp.where(z >= 0.0, 1.0, -1.0) * jnp.log(abs_z + jnp.sqrt(1.0 + abs_z * abs_z))

    dist = asinh * a_norm                                          # scaled=True
    if logits_multiplier != 1.0:
        dist = dist * logits_multiplier                            # folded into the store
    out_ref[...] = dist.astype(out_ref.dtype)


def prepare_normals(normals):
    """One-time weight prep: (P, 1, D) -> lane-dense transposed (D, Pp) + (1, Pp) norms."""
    p, s, d = normals.shape
    assert s == 1, "only num_spaces == 1 (dimensions_per_space=None) is implemented"
    a = normals.reshape(p, d).astype(jnp.float32)
    p_pad = _round_up(p, 128)                                      # lane-dense output columns
    nt = jnp.zeros((d, p_pad), jnp.float32).at[:, :p].set(a.T)
    a_norm = jnp.sqrt(jnp.sum(nt * nt, axis=0, keepdims=True))     # (1, Pp); 0 on pad cols
    return nt, a_norm


def _choose_block_rows(b, d, p_pad, max_block_rows=512,
                       vmem_tile_budget_bytes=16 * 1024 * 1024):
    """Pick a batch tile that keeps the double-buffered pipeline inside the
    scoped-VMEM defaults of every TPU generation (v7x has only 64 MiB physical)."""
    weight_bytes = 2 * 4 * (d * p_pad + p_pad)             # resident nT + a_norm
    per_row_bytes = 4 * (2 * d + 2 * p_pad + (d + p_pad))  # x/out double-buffers + live temps
    cap = max(8, (vmem_tile_budget_bytes - weight_bytes) // per_row_bytes)
    tb = min(max_block_rows, _round_up(b, 8), cap)
    return max(8, (tb // 8) * 8)


def poincare_plane_distance(x, normals, logits_multiplier=1.0, *, block_rows=512):
    """x: (..., in_features); normals: (num_planes, 1, in_features) -> (..., num_planes)."""
    *batch_dims, d = x.shape
    p = normals.shape[0]
    assert normals.shape == (p, 1, d)

    # TODO(synk): in a real module prepare_normals() would be cached at init time
    # (weights are static) instead of being re-done on every forward call.
    nt, a_norm = prepare_normals(normals)
    p_pad = nt.shape[1]

    x2d = x.reshape(-1, d).astype(jnp.float32)
    b = x2d.shape[0]

    tb = _choose_block_rows(b, d, p_pad, max_block_rows=block_rows)
    b_pad = _round_up(b, tb)
    if b_pad != b:
        x2d = jnp.pad(x2d, ((0, b_pad - b), (0, 0)))

    kernel = functools.partial(_poincare_plane_kernel,
                               logits_multiplier=float(logits_multiplier))

    out = pl.pallas_call(
        kernel,
        out_shape=jax.ShapeDtypeStruct((b_pad, p_pad), jnp.float32),
        grid=(b_pad // tb,),
        in_specs=[
            pl.BlockSpec((tb, d), lambda i: (i, 0)),        # stream batch tiles
            pl.BlockSpec((d, p_pad), lambda i: (0, 0)),     # weights stay resident
            pl.BlockSpec((1, p_pad), lambda i: (0, 0)),     # hoisted per-plane norms
        ],
        out_specs=pl.BlockSpec((tb, p_pad), lambda i: (i, 0)),
        compiler_params=pltpu.CompilerParams(
            dimension_semantics=("parallel",),              # shard batch tiles across TCs
            vmem_limit_bytes=32 * 1024 * 1024,
        ),
    )(x2d, nt, a_norm)

    return out[:b, :p].reshape(*batch_dims, p)


def _reference(x, normals, logits_multiplier=1.0):
    """Pure-JAX reference following the geoopt math path (ground truth)."""
    *batch_dims, d = x.shape
    p = normals.shape[0]
    xf = x.reshape(-1, d).astype(jnp.float32)
    a = normals.reshape(p, d).astype(jnp.float32)

    u_norm = jnp.maximum(jnp.linalg.norm(xf, axis=-1, keepdims=True), MIN_NORM)
    xb = jnp.tanh(u_norm) * xf / u_norm
    xb_norm = jnp.maximum(jnp.linalg.norm(xb, axis=-1, keepdims=True), MIN_NORM)
    xp = jnp.where(xb_norm > MAXNORM, xb / xb_norm * MAXNORM, xb)

    dot = jnp.dot(xp, a.T, precision=jax.lax.Precision.HIGHEST)
    x_sq = jnp.maximum(jnp.sum(xp * xp, -1, keepdims=True), MIN_NORM)
    a_norm = jnp.linalg.norm(a, axis=-1)[None, :]
    num = 2.0 * dot
    denom = (1.0 - x_sq) * a_norm
    sgn = jnp.where(denom >= 0.0, 1.0, -1.0)
    denom = sgn * jnp.maximum(jnp.abs(denom), MIN_NORM)
    z = num / denom
    dist = jnp.arcsinh(z) * a_norm * logits_multiplier
    return dist.reshape(*batch_dims, p)


if __name__ == "__main__":
    in_features = 32
    num_planes = 16
    batch, seq = 2, 8

    key = jax.random.PRNGKey(0)
    k_x, k_n = jax.random.split(key)

    # Module input: (..., in_features). Scale the second batch element down so
    # both the "projected to the ball boundary" and the interior (no-projection)
    # code paths are exercised.
    x = jax.random.normal(k_x, (batch, seq, in_features), dtype=jnp.float32)
    x = x.at[1].multiply(0.2)

    # Parameters per reset_parameters(): normals ~ N(0, 1/sqrt(in_features)), bias = 0.
    normals = (jax.random.normal(k_n, (num_planes, 1, in_features), dtype=jnp.float32)
               / jnp.sqrt(jnp.float32(in_features)))
    # bias = jnp.zeros((num_planes, 1, in_features))  # zeros => folded into kernel

    out = jax.block_until_ready(poincare_plane_distance(x, normals))
    ref = _reference(x, normals)

    assert out.shape == (batch, seq, num_planes)
    assert bool(jnp.all(jnp.isfinite(out)))
    # Tolerance note: near the ball boundary the arsinh argument is amplified
    # by ~2/(1 - ||x||^2) (~250x), so ulp-level differences between the fused
    # kernel and the reference are magnified; 1e-3 leaves a wide margin.
    assert jnp.allclose(out, ref, atol=1e-3, rtol=1e-3), float(jnp.max(jnp.abs(out - ref)))

    print("KERNEL_OK")
</pallas_src>

<mosaic_0001>
module attributes {stable_mosaic.version = 11 : i64} {
  func.func @_poincare_plane_kernel(%arg0: i32, %arg1: memref<16x32xf32, #tpu.memory_space<vmem>>, %arg2: memref<32x128xf32, #tpu.memory_space<vmem>>, %arg3: memref<1x128xf32, #tpu.memory_space<vmem>>, %arg4: memref<16x128xf32, #tpu.memory_space<vmem>>) attributes {dimension_semantics = [#tpu.dimension_semantics<parallel>], iteration_bounds = array<i64: 1>, scalar_prefetch = 0 : i64, scratch_operands = 0 : i64, tpu.core_type = #tpu.core_type<tc>, window_params = [{transform_indices = @transform_0, window_bounds = array<i64: 16, 32>}, {pipeline_mode = #tpu.pipeline_mode<synchronous>, transform_indices = @transform_1, window_bounds = array<i64: 32, 128>}, {pipeline_mode = #tpu.pipeline_mode<synchronous>, transform_indices = @transform_2, window_bounds = array<i64: 1, 128>}, {transform_indices = @transform_3, window_bounds = array<i64: 16, 128>}]} {
    %c0 = arith.constant 0 : index
    %c0_0 = arith.constant 0 : index
    %0 = vector.load %arg1[%c0, %c0_0] : memref<16x32xf32, #tpu.memory_space<vmem>>, vector<16x32xf32>
    %c0_1 = arith.constant 0 : index
    %c0_2 = arith.constant 0 : index
    %1 = vector.load %arg2[%c0_1, %c0_2] : memref<32x128xf32, #tpu.memory_space<vmem>>, vector<32x128xf32>
    %c0_3 = arith.constant 0 : index
    %c0_4 = arith.constant 0 : index
    %2 = vector.load %arg3[%c0_3, %c0_4] : memref<1x128xf32, #tpu.memory_space<vmem>>, vector<1x128xf32>
    %3 = arith.mulf %0, %0 : vector<16x32xf32>
    %cst = arith.constant dense<0.000000e+00> : vector<16xf32>
    %4 = vector.multi_reduction <add>, %3, %cst [1] : vector<16x32xf32> to vector<16xf32>
    %5 = vector.shape_cast %4 : vector<16xf32> to vector<16x1xf32>
    %6 = math.sqrt %5 : vector<16x1xf32>
    %cst_5 = arith.constant 1.000000e-15 : f32
    %7 = vector.broadcast %cst_5 : f32 to vector<16x1xf32>
    %8 = arith.maximumf %6, %7 : vector<16x1xf32>
    %9 = math.tanh %8 : vector<16x1xf32>
    %cst_6 = arith.constant 0.995999991 : f32
    %10 = vector.broadcast %cst_6 : f32 to vector<16x1xf32>
    %11 = arith.minimumf %9, %10 : vector<16x1xf32>
    %12 = arith.divf %11, %8 : vector<16x1xf32>
    %13 = vector.broadcast %12 : vector<16x1xf32> to vector<16x32xf32>
    %14 = arith.mulf %0, %13 : vector<16x32xf32>
    %15 = arith.mulf %11, %11 : vector<16x1xf32>
    %cst_7 = arith.constant 1.000000e-15 : f32
    %16 = vector.broadcast %cst_7 : f32 to vector<16x1xf32>
    %17 = arith.maximumf %15, %16 : vector<16x1xf32>
    %cst_8 = arith.constant dense<0.000000e+00> : vector<16x128xf32>
    %18 = tpu.matmul %14, %1, %cst_8 {dimension_numbers = #tpu.dot_dimension_numbers<[1], [0], [0], [1], [0, 0, 1, 1], [], []>, precision = #tpu.contract_precision<fp32>} : vector<16x32xf32>, vector<32x128xf32>, vector<16x128xf32> -> vector<16x128xf32>
    %cst_9 = arith.constant 2.000000e+00 : f32
    %19 = vector.broadcast %cst_9 : f32 to vector<16x128xf32>
    %20 = arith.mulf %19, %18 : vector<16x128xf32>
    %cst_10 = arith.constant 1.000000e+00 : f32
    %21 = vector.broadcast %cst_10 : f32 to vector<16x1xf32>
    %22 = arith.subf %21, %17 : vector<16x1xf32>
    %23 = vector.broadcast %22 : vector<16x1xf32> to vector<16x128xf32>
    %24 = vector.broadcast %2 : vector<1x128xf32> to vector<16x128xf32>
    %25 = arith.mulf %23, %24 : vector<16x128xf32>
    %cst_11 = arith.constant 0.000000e+00 : f32
    %26 = vector.broadcast %cst_11 : f32 to vector<16x128xf32>
    %27 = arith.cmpf oge, %25, %26 : vector<16x128xf32>
    %cst_12 = arith.constant 1.000000e+00 : f32
    %cst_13 = arith.constant -1.000000e+00 : f32
    %28 = vector.broadcast %cst_12 : f32 to vector<16x128xf32>
    %29 = vector.broadcast %cst_13 : f32 to vector<16x128xf32>
    %30 = arith.select %27, %28, %29 : vector<16x128xi1>, vector<16x128xf32>
    %31 = math.absf %25 : vector<16x128xf32>
    %cst_14 = arith.constant 1.000000e-15 : f32
    %32 = vector.broadcast %cst_14 : f32 to vector<16x128xf32>
    %33 = arith.maximumf %31, %32 : vector<16x128xf32>
    %34 = arith.mulf %30, %33 : vector<16x128xf32>
    %35 = arith.divf %20, %34 : vector<16x128xf32>
    %36 = math.absf %35 : vector<16x128xf32>
    %cst_15 = arith.constant 0.000000e+00 : f32
    %37 = vector.broadcast %cst_15 : f32 to vector<16x128xf32>
    %38 = arith.cmpf oge, %35, %37 : vector<16x128xf32>
    %cst_16 = arith.constant 1.000000e+00 : f32
    %cst_17 = arith.constant -1.000000e+00 : f32
    %39 = vector.broadcast %cst_16 : f32 to vector<16x128xf32>
    %40 = vector.broadcast %cst_17 : f32 to vector<16x128xf32>
    %41 = arith.select %38, %39, %40 : vector<16x128xi1>, vector<16x128xf32>
    %42 = arith.mulf %36, %36 : vector<16x128xf32>
    %cst_18 = arith.constant 1.000000e+00 : f32
    %43 = vector.broadcast %cst_18 : f32 to vector<16x128xf32>
    %44 = arith.addf %43, %42 : vector<16x128xf32>
    %45 = math.sqrt %44 : vector<16x128xf32>
    %46 = arith.addf %36, %45 : vector<16x128xf32>
    %47 = math.log %46 : vector<16x128xf32>
    %48 = arith.mulf %41, %47 : vector<16x128xf32>
    %49 = vector.broadcast %2 : vector<1x128xf32> to vector<16x128xf32>
    %50 = arith.mulf %48, %49 : vector<16x128xf32>
    %c0_19 = arith.constant 0 : index
    %c0_20 = arith.constant 0 : index
    %51 = vector.load %arg4[%c0_19, %c0_20] : memref<16x128xf32, #tpu.memory_space<vmem>>, vector<16x128xf32>
    tpu.vector_store %arg4[%c0_19, %c0_20], %50 {strides = array<i32>} : memref<16x128xf32, #tpu.memory_space<vmem>>, vector<16x128xf32>,
    return
  }
  func.func @transform_0(%arg0: i32) -> (i32, i32) {
    %c0_i32 = arith.constant 0 : i32
    %c0_i32_0 = arith.constant 0 : i32
    return %arg0, %c0_i32 : i32, i32
  }
  func.func @transform_1(%arg0: i32) -> (i32, i32) {
    %c0_i32 = arith.constant 0 : i32
    %c0_i32_0 = arith.constant 0 : i32
    %c0_i32_1 = arith.constant 0 : i32
    return %c0_i32, %c0_i32_0 : i32, i32
  }
  func.func @transform_2(%arg0: i32) -> (i32, i32) {
    %c0_i32 = arith.constant 0 : i32
    %c0_i32_0 = arith.constant 0 : i32
    %c0_i32_1 = arith.constant 0 : i32
    return %c0_i32, %c0_i32_0 : i32, i32
  }
  func.func @transform_3(%arg0: i32) -> (i32, i32) {
    %c0_i32 = arith.constant 0 : i32
    %c0_i32_0 = arith.constant 0 : i32
    return %arg0, %c0_i32 : i32, i32
  }
}

</mosaic_0001>

<bundles_post_ra>
// kernel: tpu_custom_call.1
= control target key start
LH: loop header
LB: loop body
LE: loop exit
PB: predicated region body
PF: predicated region fallthrough
CT: control target
= control target key end

     0   :  { %8 = vsyncpa [#allocation3], 0  ;;  %s1088_s0 = inlined_call_operand.hbm [shape: f32[16,32], index: 0, kind: input, shape index: {}]   ;;  %s1089_s1 = inlined_call_operand.hbm [shape: f32[32,128], index: 1, kind: input, shape index: {}]   ;;  %s1090_s2 = inlined_call_operand.vmem [shape: f32[1,128], index: 2, kind: input, shape index: {}]   ;;  %s1091_s3 = inlined_call_operand.hbm [shape: f32[16,128], index: 3, kind: output, shape index: {}]  }
   0x1   :  { %9 = vsyncpa [#allocation6], 0 }
   0x2   :  { %10 = vsyncpa [#allocation4], 0  ;;  %s966_s12 = smov [#allocation2]   ;;  %s894_s16 = scalar_lea.hbm %s1088_s0, 256 }
   0x3   :  { %s16_s13 = sshll.u32 %s966_s12, 4  ;;  %p895_p0 = scmp.ne.s32.totalorder %s1088_s0, %s894_s16  ;;  %s17_s13 = int_to_ptr.vmem [resolvable:$true] %s16_s13 }
   0x4   :  { %p898_p1 = scmp.lt.u32.totalorder %s894_s16, %s1088_s0 }
   0x6   :  { %p900_p2 = pnand %p898_p1, %p895_p0 }
   0x8   :  { %903 = shalt.err (!%p900_p2)
}
   0x9   :  { %s904_s21 = scalar_lea.vmem %s17_s13, 256  ;;  %p909_p4 = scmp.lt.s32.totalorder %s17_s13, %s17_s13 }
   0xa   :  { %p905_p3 = scmp.ne.s32.totalorder %s17_s13, %s904_s21  ;;  %p910_p5 = scmp.lt.s32.totalorder %s904_s21, %s904_s21 }
   0xc   :  { %p911_p6 = por %p910_p5, %p909_p4 }
   0xe   :  { %p912_p7 = pnand %p911_p6, %p905_p3 }
  0x10   :  { %915 = shalt.err (!%p912_p7)
}
  0x11   :  { %s967_s22 = smov 128   ;;  %s968_s23 = smov 8  }
  0x12   :  { %22 = dma.hbm_to_vmem [thread:$0]  %s1088_s0, 256, %s17_s13, [#allocation3], %s967_s22, %s967_s22, %s968_s23  }
  0x13   :  { %s969_s26 = smov [#allocation5]   ;;  %s916_s30 = scalar_lea.hbm %s1089_s1, 512 }
  0x14   :  { %s28_s27 = sshll.u32 %s969_s26, 4  ;;  %p917_p8 = scmp.ne.s32.totalorder %s1089_s1, %s916_s30  ;;  %s29_s27 = int_to_ptr.vmem [resolvable:$true] %s28_s27 }
  0x15   :  { %p920_p9 = scmp.lt.u32.totalorder %s916_s30, %s1089_s1 }
  0x17   :  { %p922_p10 = pnand %p920_p9, %p917_p8 }
  0x19   :  { %925 = shalt.err (!%p922_p10)
}
  0x1a   :  { %s926_s8 = scalar_lea.vmem %s29_s27, 512  ;;  %p931_p12 = scmp.lt.s32.totalorder %s29_s27, %s29_s27 }
  0x1b   :  { %p927_p11 = scmp.ne.s32.totalorder %s29_s27, %s926_s8  ;;  %p932_p13 = scmp.lt.s32.totalorder %s926_s8, %s926_s8 }
  0x1d   :  { %p933_p0 = por %p932_p13, %p931_p12 }
  0x1f   :  { %p934_p1 = pnand %p933_p0, %p927_p11 }
  0x21   :  { %937 = shalt.err (!%p934_p1)
}
  0x22   :  { %34 = dma.hbm_to_vmem [thread:$0]  %s1089_s1, 512, %s29_s27, [#allocation6], %s967_s22, %s967_s22, %s968_s23  }
  0x23   :  { %960 = dma.done.wait [#allocation3], 256  }
  0x24   :  { %961 = vsyncadd [#allocation3], 4294967040 }
  0x25   :  { %962 = dma.done.wait [#allocation6], 512  }
  0x26   :  { %963 = vsyncadd [#allocation6], 4294966784  ;;  %v1022_v0 = vld [vmem:[#allocation2] sm:$0xff]  ;;  %vm52_vm0 = vcmask 261120   ;;  %v1024_v1 = vld [vmem:[#allocation2 + $0x8] sm:$0xff] }
  0x27   :  { %v50_v2 = vmul.f32 %v1022_v0, %v1022_v0  ;;  %v51_v3 = vmul.f32 %v1024_v1, %v1024_v1  ;;  %v45_v6 = vld [vmem:[#allocation5] sm:$0xff]  ;;  %v46_v7 = vld [vmem:[#allocation5 + $0x8] sm:$0xff]  ;;  %v47_v8 = vld [vmem:[#allocation5 + $0x10] sm:$0xff] }
  0x28   :  { %v96_v9 = vand.u32 4294901760, %v45_v6  ;;  %v99_v10 = vand.u32 4294901760, %v46_v7  ;;  %v48_v11 = vld [vmem:[#allocation5 + $0x18] sm:$0xff]  ;;  %v102_v12 = vand.u32 4294901760, %v47_v8 }
  0x29   :  { %v53_v4 = vsel %vm52_vm0, %v50_v2, 0.0  ;;  %v56_v5 = vsel %vm52_vm0, %v51_v3, 0.0  ;;  %v105_v13 = vand.u32 4294901760, %v48_v11 }
  0x2a   :  { %54 = vadd.xlane.f32.xlu0 %v53_v4  ;;  %v1032_v14 = vpack.c.bf16 %v99_v10, %v96_v9  ;;  %v186_v16 = vsub.f32 %v45_v6, %v96_v9  ;;  %v193_v17 = vsub.f32 %v46_v7, %v99_v10  ;;  %v200_v23 = vsub.f32 %v47_v8, %v102_v12 }
  0x2b   :  { %v1034_v15 = vpack.c.bf16 %v105_v13, %v102_v12  ;;  %v207_v24 = vsub.f32 %v48_v11, %v105_v13 }
  0x2c   :  { %831 = vmatprep.subr.bf16.mxu0 %v1032_v14  ;;  %807 = vmatprep.subr.bf16.mxu1 %v1032_v14  ;;  %v187_v18 = vand.u32 4294901760, %v186_v16  ;;  %v194_v19 = vand.u32 4294901760, %v193_v17  ;;  %v201_v27 = vand.u32 4294901760, %v200_v23  ;;  %v1047_v36 = vpack.c.bf16 %v193_v17, %v186_v16 }
  0x2d   :  { %833 = vmatpush3.bf16.msra.mxu0 %v1032_v14  ;;  %809 = vmatpush3.bf16.msra.mxu1 %v1032_v14  ;;  %v208_v28 = vand.u32 4294901760, %v207_v24  ;;  %v1049_v37 = vpack.c.bf16 %v207_v24, %v200_v23 }
  0x2e   :  { %57 = vadd.xlane.f32.xlu0 %v56_v5  ;;  %835 = vmatprep.subr.bf16.mxu0 %v1034_v15  ;;  %v1044_v20 = vpack.c.bf16 %v194_v19, %v187_v18  ;;  %v188_v21 = vsub.f32 %v186_v16, %v187_v18  ;;  %v195_v22 = vsub.f32 %v193_v17, %v194_v19  ;;  %v1067_v17 = vld [vmem:[%s1090_s2] ss:$0 sm:$0xff]  ;;  %s971_s2 = smov [#allocation7]  }
  0x2f   :  { %811 = vmatprep.subr.bf16.mxu1 %v1034_v15  ;;  %v202_v30 = vsub.f32 %v200_v23, %v201_v27  ;;  %v842_v31 = vpack.c.bf16 %v208_v28, %v201_v27  ;;  %v209_v32 = vsub.f32 %v207_v24, %v208_v28  ;;  %v970_v23 = vmov -1.0   ;;  %s690_s11 = sshll.u32 %s971_s2, 4  ;;  %s691_s11 = int_to_ptr.vmem [resolvable:$true] %s690_s11 }
  0x30   :  { %v189_v25 = vand.u32 4294901760, %v188_v21  ;;  %v196_v26 = vand.u32 4294901760, %v195_v22  ;;  %s938_s12 = scalar_lea.vmem %s691_s11, 256  ;;  %p943_p3 = scmp.lt.s32.totalorder %s691_s11, %s691_s11 }
  0x31   :  { %837 = vmatpush3.bf16.msra.mxu0 %v1034_v15  ;;  %813 = vmatpush3.bf16.msra.mxu1 %v1034_v15  ;;  %v203_v33 = vand.u32 4294901760, %v202_v30  ;;  %v210_v34 = vand.u32 4294901760, %v209_v32  ;;  %p939_p2 = scmp.ne.s32.totalorder %s691_s11, %s938_s12  ;;  %p944_p4 = scmp.lt.s32.totalorder %s938_s12, %s938_s12 }
  0x32   :  { %839 = vmatprep.subr.bf16.mxu0 %v1044_v20  ;;  %v814_v29 = vpack.c.bf16 %v196_v26, %v189_v25 }
  0x33   :  { %v818_v35 = vpack.c.bf16 %v210_v34, %v203_v33  ;;  %p945_p5 = por %p944_p4, %p943_p3 }
  0x34   :  { %815 = vmatprep.subr.bf16.mxu1 %v814_v29 }
  0x35   :  { %p946_p6 = pnand %p945_p5, %p939_p2 }
  0xb7   :  { %v55_v38 = vpop.xlane.xlu0 %54 }
  0xb8   :  { %870 = vrsqrt.f32 %v55_v38  ;;  %vm61_vm1 = vcmp.eq.f32.partialorder %v55_v38, inf  ;;  %v64_v42 = vand.u32 2147483648, %v55_v38  ;;  %vm63_vm2 = vcmp.eq.f32.partialorder %v55_v38, 0.0 }
  0xbb   :  { %v58_v39 = vpop.xlane.xlu0 %57 }
  0xbc   :  { %872 = vrsqrt.f32 %v58_v39  ;;  %vm68_vm3 = vcmp.eq.f32.partialorder %v58_v39, inf  ;;  %v71_v48 = vand.u32 2147483648, %v58_v39  ;;  %vm70_vm4 = vcmp.eq.f32.partialorder %v58_v39, 0.0 }
  0xc2   :  { %v871_v40 = vpop.eup %870 }
  0xc3   :  { %v60_v41 = vmul.f32 %v871_v40, %v55_v38 }
  0xc5   :  { %v62_v43 = vsel %vm61_vm1, %v55_v38, %v60_v41 }
  0xc6   :  { %v873_v44 = vpop.eup %872  ;;  %v65_v45 = vsel %vm63_vm2, %v64_v42, %v62_v43 }
  0xc7   :  { %v73_v46 = vmax.f32 %v65_v45, 1e-15  ;;  %v67_v47 = vmul.f32 %v873_v44, %v58_v39 }
  0xc9   :  { %v69_v49 = vsel %vm68_vm3, %v58_v39, %v67_v47  ;;  %874 = vtanh.f32 %v73_v46 }
  0xca   :  { %v72_v50 = vsel %vm70_vm4, %v71_v48, %v69_v49  ;;  %876 = vrcp.f32 %v73_v46 }
  0xcb   :  { %v74_v51 = vmax.f32 %v72_v50, 1e-15 }
  0xcd   :  { %878 = vtanh.f32 %v74_v51 }
  0xce   :  { %880 = vrcp.f32 %v74_v51 }
  0xd3   :  { %v875_v52 = vpop.eup %874 }
  0xd4   :  { %v77_v53 = vmin.f32 %v875_v52, 0.996  ;;  %v877_v54 = vpop.eup %876 }
  0xd6   :  { %v80_v56 = vmul.f32 %v877_v54, %v77_v53  ;;  %v85_v11 = vmul.f32 %v77_v53, %v77_v53 }
  0xd7   :  { %v879_v55 = vpop.eup %878 }
  0xd8   :  { %v78_v57 = vmin.f32 %v879_v55, 0.996  ;;  %v881_v58 = vpop.eup %880  ;;  %v83_v59 = vmul.f32 %v80_v56, %v1022_v0  ;;  %v87_v13 = vmax.f32 %v85_v11, 1e-15 }
  0xda   :  { %v82_v60 = vmul.f32 %v881_v58, %v78_v57  ;;  %v90_v61 = vsel %vm52_vm0, %v83_v59, 0  ;;  %v625_v16 = vsub.f32 1.0, %v87_v13 }
  0xdb   :  { %v164_v62 = vand.u32 4294901760, %v90_v61 }
  0xdc   :  { %v84_v63 = vmul.f32 %v82_v60, %v1024_v1  ;;  %v86_v1 = vmul.f32 %v78_v57, %v78_v57 }
  0xdd   :  { %v165_v2 = vsub.f32 %v90_v61, %v164_v62 }
  0xde   :  { %v93_v3 = vsel %vm52_vm0, %v84_v63, 0  ;;  %v88_v12 = vmax.f32 %v86_v1, 1e-15 }
  0xdf   :  { %v174_v4 = vand.u32 4294901760, %v93_v3  ;;  %v166_v5 = vand.u32 4294901760, %v165_v2 }
  0xe1   :  { %v175_v6 = vsub.f32 %v93_v3, %v174_v4  ;;  %781 = vmatprep.mubr.f32.mxu0 %v166_v5  ;;  %v167_v7 = vsub.f32 %v165_v2, %v166_v5 }
  0xe3   :  { %v176_v8 = vand.u32 4294901760, %v175_v6  ;;  %v168_v9 = vand.u32 4294901760, %v167_v7 }
  0xe5   :  { %782 = vmatmul.mubr.f32.vlgmr.msra.gmra.mrb[0].mxu0 %v176_v8  ;;  %v177_v10 = vsub.f32 %v175_v6, %v176_v8  ;;  %748 = vmatprep.mubr.f32.mxu1 %v168_v9 }
  0xe6   :  { %841 = vmatpush3.bf16.msra.mxu0 %v1044_v20  ;;  %792 = vmatprep.mubr.f32.mxu0 %v164_v62 }
  0xe7   :  { %v178_v0 = vand.u32 4294901760, %v177_v10  ;;  %843 = vmatprep.subr.bf16.mxu0 %v842_v31 }
  0xe9   :  { %749 = vmatmul.mubr.f32.vlgmr.msra.gmra.mrb[0].mxu1 %v178_v0 }
  0xea   :  { %817 = vmatpush3.bf16.msra.mxu1 %v814_v29  ;;  %759 = vmatprep.mubr.f32.mxu1 %v164_v62 }
  0xeb   :  { %845 = vmatpush3.bf16.msra.mxu0 %v842_v31  ;;  %819 = vmatprep.subr.bf16.mxu1 %v818_v35 }
  0xec   :  { %847 = vmatprep.subr.bf16.mxu0 %v1032_v14 }
  0xee   :  { %821 = vmatpush3.bf16.msra.mxu1 %v818_v35  ;;  %793 = vmatmul.mubr.f32.vlgmr.msra.gmra.mrb[0].mxu0 %v174_v4 }
  0xef   :  { %849 = vmatpush3.bf16.msra.mxu0 %v1032_v14  ;;  %803 = vmatprep.mubr.f32.mxu0 %v164_v62  ;;  %v626_v14 = vsub.f32 1.0, %v88_v12 }
  0xf0   :  { %823 = vmatprep.subr.bf16.mxu1 %v1047_v36  ;;  %851 = vmatprep.subr.bf16.mxu0 %v1034_v15 }
  0xf1   :  { %760 = vmatmul.mubr.f32.vlgmr.msra.gmra.mrb[0].mxu1 %v174_v4  ;;  %v634_v18 = vmul.f32 %v1067_v17, %v626_v14 }
  0xf2   :  { %825 = vmatpush3.bf16.msra.mxu1 %v1047_v36  ;;  %770 = vmatprep.mubr.f32.mxu1 %v165_v2 }
  0xf3   :  { %853 = vmatpush3.bf16.msra.mxu0 %v1034_v15  ;;  %827 = vmatprep.subr.bf16.mxu1 %v1049_v37  ;;  %v633_v15 = vmul.f32 %v1067_v17, %v625_v16  ;;  %v640_v19 = vand.u32 2147483647, %v634_v18  ;;  %vm636_vm5 = vcmp.ge.f32.partialorder %v634_v18, 0.0 }
  0xf4   :  { %v638_v24 = vsel %vm636_vm5, 1.0, %v970_v23 }
  0xf5   :  { %v639_v20 = vand.u32 2147483647, %v633_v15  ;;  %v642_v21 = vmax.f32 %v640_v19, 1e-15  ;;  %vm635_vm6 = vcmp.ge.f32.partialorder %v633_v15, 0.0 }
  0xf6   :  { %829 = vmatpush3.bf16.msra.mxu1 %v1049_v37  ;;  %804 = vmatmul.mubr.f32.vlgmr.msra.gmra.mrb[0].mxu0 %v174_v4  ;;  %v637_v25 = vsel %vm635_vm6, 1.0, %v970_v23 }
  0xf7   :  { %v641_v22 = vmax.f32 %v639_v20, 1e-15  ;;  %v644_v26 = vmul.f32 %v642_v21, %v638_v24 }
  0xf9   :  { %771 = vmatmul.mubr.f32.vlgmr.msra.gmra.mrb[0].mxu1 %v175_v6  ;;  %v643_v27 = vmul.f32 %v641_v22, %v637_v25  ;;  %882 = vrcp.f32 %v644_v26 }
  0xfb   :  { %884 = vrcp.f32 %v643_v27 }
 0x103   :  { %v883_v35 = vpop.eup %882 }
 0x105   :  { %v885_v37 = vpop.eup %884 }
 0x1c9   :  { %v805_v28 = vpop.f32.mrb[0].mxu0 }
 0x1ca   :  { %v613_v29 = vpop.f32.mrb[1].mxu0 }
 0x1cc   :  { %v772_v30 = vpop.f32.mrb[0].mxu1 }
 0x1cd   :  { %v854_v31 = vadd.f32 %v805_v28, %v772_v30  ;;  %v357_v32 = vpop.f32.mrb[1].mxu1 }
 0x1ce   :  { %v855_v33 = vadd.f32 %v613_v29, %v357_v32 }
 0x1cf   :  { %v624_v34 = vmul.f32 2.0, %v854_v31 }
 0x1d0   :  { %v623_v36 = vmul.f32 2.0, %v855_v33 }
 0x1d1   :  { %v648_v38 = vmul.f32 %v883_v35, %v624_v34 }
 0x1d2   :  { %v646_v39 = vmul.f32 %v885_v37, %v623_v36 }
 0x1d3   :  { %v650_v40 = vand.u32 2147483647, %v648_v38  ;;  %vm652_vm11 = vcmp.ge.f32.partialorder %v648_v38, 0.0 }
 0x1d4   :  { %v649_v41 = vand.u32 2147483647, %v646_v39  ;;  %vm651_vm12 = vcmp.ge.f32.partialorder %v646_v39, 0.0  ;;  %v654_v61 = vsel %vm652_vm11, 1.0, %v970_v23 }
 0x1d5   :  { %v656_v42 = vmul.f32 %v650_v40, %v650_v40  ;;  %v653_v2 = vsel %vm651_vm12, 1.0, %v970_v23 }
 0x1d6   :  { %v655_v43 = vmul.f32 %v649_v41, %v649_v41 }
 0x1d7   :  { %v658_v44 = vadd.f32 1.0, %v656_v42 }
 0x1d8   :  { %v657_v45 = vadd.f32 1.0, %v655_v43 }
 0x1d9   :  { %886 = vrsqrt.f32 %v658_v44  ;;  %vm668_vm7 = vcmp.eq.f32.partialorder %v658_v44, inf  ;;  %v671_v49 = vand.u32 2147483648, %v658_v44  ;;  %vm670_vm8 = vcmp.eq.f32.partialorder %v658_v44, 0.0 }
 0x1da   :  { %888 = vrsqrt.f32 %v657_v45  ;;  %vm661_vm9 = vcmp.eq.f32.partialorder %v657_v45, inf  ;;  %v664_v52 = vand.u32 2147483648, %v657_v45  ;;  %vm663_vm10 = vcmp.eq.f32.partialorder %v657_v45, 0.0 }
 0x1e3   :  { %v887_v46 = vpop.eup %886 }
 0x1e4   :  { %v889_v47 = vpop.eup %888  ;;  %v667_v48 = vmul.f32 %v887_v46, %v658_v44 }
 0x1e5   :  { %v660_v50 = vmul.f32 %v889_v47, %v657_v45 }
 0x1e6   :  { %v669_v51 = vsel %vm668_vm7, %v658_v44, %v667_v48 }
 0x1e7   :  { %v672_v53 = vsel %vm670_vm8, %v671_v49, %v669_v51  ;;  %v662_v54 = vsel %vm661_vm9, %v657_v45, %v660_v50 }
 0x1e8   :  { %v674_v55 = vadd.f32 %v672_v53, %v650_v40  ;;  %v665_v56 = vsel %vm663_vm10, %v664_v52, %v662_v54 }
 0x1e9   :  { %v673_v57 = vadd.f32 %v665_v56, %v649_v41 }
 0x1ea   :  { %890 = vlog2.f32 %v674_v55 }
 0x1eb   :  { %892 = vlog2.f32 %v673_v57 }
 0x1f4   :  { %v891_v58 = vpop.eup %890 }
 0x1f5   :  { %v893_v59 = vpop.eup %892  ;;  %v678_v60 = vmul.f32 0.6931472, %v891_v58 }
 0x1f6   :  { %v676_v62 = vmul.f32 0.6931472, %v893_v59 }
 0x1f7   :  { %v680_v63 = vmul.f32 %v678_v60, %v654_v61 }
 0x1f8   :  { %v679_v3 = vmul.f32 %v676_v62, %v653_v2 }
 0x1f9   :  { %v682_v4 = vmul.f32 %v1067_v17, %v680_v63 }
 0x1fa   :  { %v681_v5 = vmul.f32 %v1067_v17, %v679_v3 }
 0x1fb   :  { %684 = vst [vmem:[#allocation7 + $0x8] sm:$0xff] %v682_v4 }
 0x1fc   :  { %683 = vst [vmem:[#allocation7] sm:$0xff] %v681_v5 }
 0x1fd   :  { %949 = shalt.err (!%p946_p6)
}
 0x1fe   :  { %s950_s15 = scalar_lea.hbm %s1091_s3, 256 }
 0x1ff   :  { %p951_p7 = scmp.ne.s32.totalorder %s1091_s3, %s950_s15  ;;  %p954_p8 = scmp.lt.u32.totalorder %s950_s15, %s1091_s3 }
 0x201   :  { %p956_p9 = pnand %p954_p8, %p951_p7 }
 0x203   :  { %959 = shalt.err (!%p956_p9)
}
 0x204   :  { %696 = dma.vmem_to_hbm [thread:$0]  %s691_s11, 256, %s1091_s3, [#allocation4], %s967_s22, %s967_s22, %s968_s23  }
 0x205   :  { %964 = dma.done.wait [#allocation4], 256  }
 0x206   :  { %965 = vsyncadd [#allocation4], 4294967040 }
 0x207   :  { %700 = vsyncpa [#allocation3], 1 }
 0x208   :  { %701 = vsyncpa [#allocation6], 1 }
 0x209   :  { %702 = vsyncpa [#allocation4], 1 }

</bundles_post_ra>
